<compile_context>
chip_gen: v7x
topology: tpu7x:2x2x1
jax: 0.10.0
libtpu: 0.0.40
codegen_flags: <defaults>
</compile_context>

<pallas_src>
import functools

import jax
import jax.numpy as jnp
from jax.experimental import pallas as pl
from jax.experimental.pallas import tpu as pltpu

LANES = 128  # TPU lane width; hidden-cat and output slab are padded to this.


def _round_up(x, m):
    return (x + m - 1) // m * m


def _actor_critic_kernel(obs_ref, p1_ref, p2_ref, out_ref, *, n_act):
    """Fused actor+critic forward on one batch tile.

    obs_ref : [TB, D]  f32
    p1_ref  : [Dp+8, 128]  rows 0..D-1 = [wa1 | wc1 | 0]; bias row at row Dp
              (Dp = round_up(D, 8)); remaining rows are zero padding.
    p2_ref  : [136, 128]   rows 0..127 = actor-head W (cols 0..A-1) with the
              critic weight column at col A+1; row 128 = bias row.
    out_ref : [TB, 128]    lanes 0..A-1 logits, A logp, A+1 vpred, A+2 act.
    """
    d = obs_ref.shape[1]
    d_pad = _round_up(d, 8)
    hcat = p1_ref.shape[1]                                    # 128

    # In-kernel f32 -> bf16 cast (avoids a separate wrapper XLA pass).
    obs = obs_ref[...].astype(p1_ref.dtype)                   # [TB, D] bf16

    # ---- fused first layer (actor || critic) --------------------------------
    w1 = p1_ref[:d, :]                                        # [D, 128]
    b1 = p1_ref[d_pad:d_pad + 1, :].astype(jnp.float32)       # [1, 128]
    hid = jnp.tanh(
        jnp.dot(obs, w1, preferred_element_type=jnp.float32) + b1
    )                                                         # [TB, 128] f32
    hid = hid.astype(p2_ref.dtype)                            # bf16 MXU feed

    # ---- fused second layer: actor logits + critic value in one matmul ------
    w2 = p2_ref[:hcat, :]                                     # [128, 128]
    b2 = p2_ref[hcat:hcat + 1, :].astype(jnp.float32)         # [1, 128]
    z = jnp.dot(hid, w2, preferred_element_type=jnp.float32) + b2  # [TB, 128]
    # z lanes: 0..A-1 = logits, A+1 = vpred (critic column), rest = don't care.

    width = z.shape[1]
    col = jax.lax.broadcasted_iota(jnp.int32, (1, width), 1)  # 1 vreg; bcast

    # Mask pad lanes to -inf for max / argmax / logsumexp (f32 math).
    logits_m = jnp.where(col < n_act, z, -jnp.inf)
    max_l = jnp.max(logits_m, axis=-1, keepdims=True)          # [TB, 1]
    cand = jnp.where(logits_m == max_l, col, width)            # first-tie idx
    act = jnp.min(cand, axis=-1, keepdims=True)                # [TB, 1] int32

    p = jnp.exp(logits_m - max_l)
    lse = max_l + jnp.log(jnp.sum(p, axis=-1, keepdims=True))
    logp = max_l - lse                                         # [TB, 1]

    # ---- assemble the single lane-dense output slab --------------------------
    out = jnp.where(col == n_act, logp, z)                     # lane A   = logp
    out = jnp.where(col == n_act + 2, act.astype(jnp.float32), out)  # A+2 = act
    out_ref[...] = out.astype(out_ref.dtype)  # lanes <A logits, A+1 vpred


def pack_params(params, param_dtype=jnp.bfloat16):
    """Pack the 8 weight/bias arrays into 2 kernel-ready, lane-padded blobs.

    Call ONCE per rollout (params are static across a rollout); the forward
    takes the packed blobs so no tiny scatter ops run per invocation.
    """
    wa1, ba1 = params["wa1"], params["ba1"]
    wa2, ba2 = params["wa2"], params["ba2"]
    wc1, bc1 = params["wc1"], params["bc1"]
    wc2, bc2 = params["wc2"], params["bc2"]
    d, h = wa1.shape
    n_act = wa2.shape[1]
    assert 2 * h <= LANES, "fused hidden (2H) must fit in 128 lanes"
    assert n_act + 3 <= LANES, "n_act + 3 must fit in the 128-lane output slab"

    d_pad = _round_up(d, 8)

    # Blob 1: fused first layer. Weight rows 0..D-1, bias row at 8-aligned
    # offset d_pad, total rows padded to a multiple of 8.
    p1 = jnp.zeros((d_pad + 8, LANES), jnp.float32)
    p1 = p1.at[:d, :h].set(wa1)
    p1 = p1.at[:d, h:2 * h].set(wc1)
    p1 = p1.at[d_pad, :h].set(ba1.reshape(h))
    p1 = p1.at[d_pad, h:2 * h].set(bc1.reshape(h))

    # Blob 2: fused heads. Actor head in cols 0..A-1 (rows 0..H-1), critic
    # head as the extra column A+1 (rows H..2H-1), bias row at row 128.
    p2 = jnp.zeros((LANES + 8, LANES), jnp.float32)
    p2 = p2.at[:h, :n_act].set(wa2)
    p2 = p2.at[h:2 * h, n_act + 1].set(wc2.reshape(h))
    p2 = p2.at[LANES, :n_act].set(ba2.reshape(n_act))
    p2 = p2.at[LANES, n_act + 1].set(bc2.reshape(()))
    return p1.astype(param_dtype), p2.astype(param_dtype), n_act


def _choose_tb(B, block_rows):
    """Batch tile: big (amortize ~0.35us/step), multiple of 8, and >=2 grid
    steps whenever B allows so v7x's two TensorCores both get work."""
    if B <= 8:
        return B                      # single tiny (full-extent) tile
    tb = min(block_rows, _round_up(pl.cdiv(B, 2), 8))
    return max(8, tb)


def actor_critic_forward(obs, p1, p2, n_act, *, block_rows=4096,
                         out_dtype=jnp.float32):
    """Fused ActorCritic forward. obs: [B, D] float32, p1/p2 from pack_params.

    Returns dict mirroring Batch(dist=..., act=..., policy=Batch(logp, vpred)).
    Intended to be wrapped in jax.jit by the caller so the slab slicing below
    fuses with downstream consumers instead of re-reading the slab.
    """
    B, D = obs.shape
    tb = _choose_tb(B, block_rows)
    grid = (pl.cdiv(B, tb),)

    # Rough double-buffered VMEM budget; keep headroom under v7x's 64 MiB.
    out_bytes = jnp.dtype(out_dtype).itemsize
    need = (2 * (tb * D * obs.dtype.itemsize + tb * LANES * out_bytes)
            + 2 * (p1.size + p2.size) * p1.dtype.itemsize)
    vmem_limit = int(min(max(2 * need, 32 << 20), 60 << 20))

    kernel = functools.partial(_actor_critic_kernel, n_act=n_act)
    out = pl.pallas_call(
        kernel,
        out_shape=jax.ShapeDtypeStruct((B, LANES), out_dtype),
        grid=grid,
        in_specs=[
            pl.BlockSpec((tb, D), lambda i: (i, 0)),       # obs tile (f32)
            pl.BlockSpec(p1.shape, lambda i: (0, 0)),      # layer-1 blob
            pl.BlockSpec(p2.shape, lambda i: (0, 0)),      # heads blob
        ],
        out_specs=pl.BlockSpec((tb, LANES), lambda i: (i, 0)),
        compiler_params=pltpu.CompilerParams(
            dimension_semantics=("parallel",),
            vmem_limit_bytes=vmem_limit),
    )(obs, p1, p2)

    logits = out[:, :n_act].astype(jnp.float32)
    logp = out[:, n_act].astype(jnp.float32)
    vpred = out[:, n_act + 1].astype(jnp.float32)
    act = out[:, n_act + 2].astype(jnp.int32)

    return {
        "dist": {"logits": logits},
        "act": act,
        "policy": {"logp": logp, "vpred": vpred},
    }


def init_params(key, obs_dim, hidden, n_act):
    ks = jax.random.split(key, 4)
    s1 = 1.0 / jnp.sqrt(obs_dim)
    s2 = 1.0 / jnp.sqrt(hidden)
    return {
        "wa1": jax.random.normal(ks[0], (obs_dim, hidden), jnp.float32) * s1,
        "ba1": jnp.zeros((1, hidden), jnp.float32),
        "wa2": jax.random.normal(ks[1], (hidden, n_act), jnp.float32) * s2,
        "ba2": jnp.zeros((1, n_act), jnp.float32),
        "wc1": jax.random.normal(ks[2], (obs_dim, hidden), jnp.float32) * s1,
        "bc1": jnp.zeros((1, hidden), jnp.float32),
        "wc2": jax.random.normal(ks[3], (hidden, 1), jnp.float32) * s2,
        "bc2": jnp.zeros((1, 1), jnp.float32),
    }


if __name__ == "__main__":
    B, OBS_DIM, HIDDEN, N_ACT = 8, 32, 32, 8

    key = jax.random.PRNGKey(0)
    k_obs, k_par = jax.random.split(key)
    obs = jax.random.normal(k_obs, (B, OBS_DIM), jnp.float32)
    params = init_params(k_par, OBS_DIM, HIDDEN, N_ACT)

    # Pack once per rollout (hoisted out of the per-step path).
    p1, p2, n_act = pack_params(params)

    fwd = jax.jit(functools.partial(actor_critic_forward, n_act=n_act))
    out = fwd(obs, p1, p2)
    jax.block_until_ready(out)

    # ---- plain-JAX reference mirroring the kernel's bf16 quantization points
    bf = jnp.bfloat16
    obs_b = obs.astype(bf)
    w1c = jnp.concatenate([params["wa1"], params["wc1"]], axis=1).astype(bf)
    b1c = jnp.concatenate([params["ba1"], params["bc1"]], axis=1)
    b1c = b1c.astype(bf).astype(jnp.float32)
    h_f32 = jnp.tanh(
        jnp.dot(obs_b, w1c, preferred_element_type=jnp.float32) + b1c)
    h_b = h_f32.astype(bf)
    h_a, h_c = h_b[:, :HIDDEN], h_b[:, HIDDEN:]
    logits_ref = (
        jnp.dot(h_a, params["wa2"].astype(bf),
                preferred_element_type=jnp.float32)
        + params["ba2"].astype(bf).astype(jnp.float32))
    vpred_ref = (
        jnp.dot(h_c, params["wc2"].astype(bf),
                preferred_element_type=jnp.float32)
        + params["bc2"].astype(bf).astype(jnp.float32))[:, 0]
    logp_ref = (jnp.max(logits_ref, axis=-1)
                - jax.scipy.special.logsumexp(logits_ref, axis=-1))

    assert jnp.allclose(out["dist"]["logits"], logits_ref, atol=5e-3), "logits"
    # act must be the (first-tie) argmax of the logits the kernel produced.
    assert jnp.array_equal(
        out["act"],
        jnp.argmax(out["dist"]["logits"], axis=-1).astype(jnp.int32)), "act"
    assert jnp.allclose(out["policy"]["logp"], logp_ref, atol=5e-3), "logp"
    assert jnp.allclose(out["policy"]["vpred"], vpred_ref, atol=5e-3), "vpred"

    print("KERNEL_OK")
</pallas_src>

<mosaic_0001>
module attributes {stable_mosaic.version = 11 : i64} {
  func.func @_actor_critic_kernel(%arg0: i32, %arg1: memref<8x32xf32, #tpu.memory_space<vmem>>, %arg2: memref<40x128xbf16, #tpu.memory_space<vmem>>, %arg3: memref<136x128xbf16, #tpu.memory_space<vmem>>, %arg4: memref<8x128xf32, #tpu.memory_space<vmem>>) attributes {dimension_semantics = [#tpu.dimension_semantics<parallel>], iteration_bounds = array<i64: 1>, scalar_prefetch = 0 : i64, scratch_operands = 0 : i64, tpu.core_type = #tpu.core_type<tc>, window_params = [{transform_indices = @transform_0, window_bounds = array<i64: 8, 32>}, {pipeline_mode = #tpu.pipeline_mode<synchronous>, transform_indices = @transform_1, window_bounds = array<i64: 40, 128>}, {pipeline_mode = #tpu.pipeline_mode<synchronous>, transform_indices = @transform_2, window_bounds = array<i64: 136, 128>}, {transform_indices = @transform_3, window_bounds = array<i64: 8, 128>}]} {
    %c0 = arith.constant 0 : index
    %c0_0 = arith.constant 0 : index
    %0 = vector.load %arg1[%c0, %c0_0] : memref<8x32xf32, #tpu.memory_space<vmem>>, vector<8x32xf32>
    %1 = arith.truncf %0 : vector<8x32xf32> to vector<8x32xbf16>
    %c0_1 = arith.constant 0 : index
    %c0_2 = arith.constant 0 : index
    %2 = vector.load %arg2[%c0_1, %c0_2] : memref<40x128xbf16, #tpu.memory_space<vmem>>, vector<32x128xbf16>
    %c32 = arith.constant 32 : index
    %c0_3 = arith.constant 0 : index
    %3 = vector.load %arg2[%c32, %c0_3] : memref<40x128xbf16, #tpu.memory_space<vmem>>, vector<1x128xbf16>
    %4 = arith.extf %3 : vector<1x128xbf16> to vector<1x128xf32>
    %cst = arith.constant dense<0.000000e+00> : vector<8x128xf32>
    %5 = tpu.matmul %1, %2, %cst {dimension_numbers = #tpu.dot_dimension_numbers<[1], [0], [0], [1], [0, 0, 1, 1], [], []>} : vector<8x32xbf16>, vector<32x128xbf16>, vector<8x128xf32> -> vector<8x128xf32>
    %6 = vector.broadcast %4 : vector<1x128xf32> to vector<8x128xf32>
    %7 = arith.addf %5, %6 : vector<8x128xf32>
    %8 = math.tanh %7 : vector<8x128xf32>
    %9 = arith.truncf %8 : vector<8x128xf32> to vector<8x128xbf16>
    %c0_4 = arith.constant 0 : index
    %c0_5 = arith.constant 0 : index
    %10 = vector.load %arg3[%c0_4, %c0_5] : memref<136x128xbf16, #tpu.memory_space<vmem>>, vector<128x128xbf16>
    %c128 = arith.constant 128 : index
    %c0_6 = arith.constant 0 : index
    %11 = vector.load %arg3[%c128, %c0_6] : memref<136x128xbf16, #tpu.memory_space<vmem>>, vector<1x128xbf16>
    %12 = arith.extf %11 : vector<1x128xbf16> to vector<1x128xf32>
    %cst_7 = arith.constant dense<0.000000e+00> : vector<8x128xf32>
    %13 = tpu.matmul %9, %10, %cst_7 {dimension_numbers = #tpu.dot_dimension_numbers<[1], [0], [0], [1], [0, 0, 1, 1], [], []>} : vector<8x128xbf16>, vector<128x128xbf16>, vector<8x128xf32> -> vector<8x128xf32>
    %14 = vector.broadcast %12 : vector<1x128xf32> to vector<8x128xf32>
    %15 = arith.addf %13, %14 : vector<8x128xf32>
    %16 = tpu.iota {dimensions = array<i32: 1>} : vector<1x128xi32>
    %c8_i32 = arith.constant 8 : i32
    %17 = vector.broadcast %c8_i32 : i32 to vector<1x128xi32>
    %18 = arith.cmpi slt, %16, %17 : vector<1x128xi32>
    %cst_8 = arith.constant 0xFF800000 : f32
    %19 = vector.shape_cast %18 : vector<1x128xi1> to vector<1x128xi1>
    %20 = vector.broadcast %19 : vector<1x128xi1> to vector<8x128xi1>
    %21 = vector.broadcast %cst_8 : f32 to vector<8x128xf32>
    %22 = arith.select %20, %15, %21 : vector<8x128xi1>, vector<8x128xf32>
    %cst_9 = arith.constant dense<0xFF800000> : vector<8xf32>
    %23 = vector.multi_reduction <maximumf>, %22, %cst_9 [1] : vector<8x128xf32> to vector<8xf32>
    %24 = vector.shape_cast %23 : vector<8xf32> to vector<8x1xf32>
    %25 = vector.broadcast %24 : vector<8x1xf32> to vector<8x128xf32>
    %26 = arith.cmpf oeq, %22, %25 : vector<8x128xf32>
    %c128_i32 = arith.constant 128 : i32
    %27 = vector.shape_cast %16 : vector<1x128xi32> to vector<1x128xi32>
    %28 = vector.broadcast %27 : vector<1x128xi32> to vector<8x128xi32>
    %29 = vector.broadcast %c128_i32 : i32 to vector<8x128xi32>
    %30 = arith.select %26, %28, %29 : vector<8x128xi1>, vector<8x128xi32>
    %cst_10 = arith.constant dense<2147483647> : vector<8xi32>
    %31 = vector.multi_reduction <minsi>, %30, %cst_10 [1] : vector<8x128xi32> to vector<8xi32>
    %32 = vector.shape_cast %31 : vector<8xi32> to vector<8x1xi32>
    %33 = vector.broadcast %24 : vector<8x1xf32> to vector<8x128xf32>
    %34 = arith.subf %22, %33 : vector<8x128xf32>
    %35 = math.exp %34 : vector<8x128xf32>
    %cst_11 = arith.constant dense<0.000000e+00> : vector<8xf32>
    %36 = vector.multi_reduction <add>, %35, %cst_11 [1] : vector<8x128xf32> to vector<8xf32>
    %37 = vector.shape_cast %36 : vector<8xf32> to vector<8x1xf32>
    %38 = math.log %37 : vector<8x1xf32>
    %39 = arith.addf %24, %38 : vector<8x1xf32>
    %40 = arith.subf %24, %39 : vector<8x1xf32>
    %c8_i32_12 = arith.constant 8 : i32
    %41 = vector.broadcast %c8_i32_12 : i32 to vector<1x128xi32>
    %42 = arith.cmpi eq, %16, %41 : vector<1x128xi32>
    %43 = vector.shape_cast %42 : vector<1x128xi1> to vector<1x128xi1>
    %44 = vector.broadcast %43 : vector<1x128xi1> to vector<8x128xi1>
    %45 = vector.shape_cast %40 : vector<8x1xf32> to vector<8x1xf32>
    %46 = vector.broadcast %45 : vector<8x1xf32> to vector<8x128xf32>
    %47 = arith.select %44, %46, %15 : vector<8x128xi1>, vector<8x128xf32>
    %c10_i32 = arith.constant 10 : i32
    %48 = vector.broadcast %c10_i32 : i32 to vector<1x128xi32>
    %49 = arith.cmpi eq, %16, %48 : vector<1x128xi32>
    %50 = arith.sitofp %32 : vector<8x1xi32> to vector<8x1xf32>
    %51 = vector.shape_cast %49 : vector<1x128xi1> to vector<1x128xi1>
    %52 = vector.broadcast %51 : vector<1x128xi1> to vector<8x128xi1>
    %53 = vector.shape_cast %50 : vector<8x1xf32> to vector<8x1xf32>
    %54 = vector.broadcast %53 : vector<8x1xf32> to vector<8x128xf32>
    %55 = arith.select %52, %54, %47 : vector<8x128xi1>, vector<8x128xf32>
    %c0_13 = arith.constant 0 : index
    %c0_14 = arith.constant 0 : index
    %56 = vector.load %arg4[%c0_13, %c0_14] : memref<8x128xf32, #tpu.memory_space<vmem>>, vector<8x128xf32>
    tpu.vector_store %arg4[%c0_13, %c0_14], %55 {strides = array<i32>} : memref<8x128xf32, #tpu.memory_space<vmem>>, vector<8x128xf32>,
    return
  }
  func.func @transform_0(%arg0: i32) -> (i32, i32) {
    %c0_i32 = arith.constant 0 : i32
    %c0_i32_0 = arith.constant 0 : i32
    return %arg0, %c0_i32 : i32, i32
  }
  func.func @transform_1(%arg0: i32) -> (i32, i32) {
    %c0_i32 = arith.constant 0 : i32
    %c0_i32_0 = arith.constant 0 : i32
    %c0_i32_1 = arith.constant 0 : i32
    return %c0_i32, %c0_i32_0 : i32, i32
  }
  func.func @transform_2(%arg0: i32) -> (i32, i32) {
    %c0_i32 = arith.constant 0 : i32
    %c0_i32_0 = arith.constant 0 : i32
    %c0_i32_1 = arith.constant 0 : i32
    return %c0_i32, %c0_i32_0 : i32, i32
  }
  func.func @transform_3(%arg0: i32) -> (i32, i32) {
    %c0_i32 = arith.constant 0 : i32
    %c0_i32_0 = arith.constant 0 : i32
    return %arg0, %c0_i32 : i32, i32
  }
}

</mosaic_0001>

<bundles_post_ra>
// kernel: actor_critic_forward.1
= control target key start
LH: loop header
LB: loop body
LE: loop exit
PB: predicated region body
PF: predicated region fallthrough
CT: control target
= control target key end

     0   :  { %8 = vsyncpa [#allocation3], 0  ;;  %s499_s0 = inlined_call_operand.hbm [shape: f32[8,32], index: 0, kind: input, shape index: {}]   ;;  %s500_s1 = inlined_call_operand.hbm [shape: bf16[40,128], index: 1, kind: input, shape index: {}]   ;;  %s501_s2 = inlined_call_operand.hbm [shape: bf16[136,128], index: 2, kind: input, shape index: {}]   ;;  %s502_s3 = inlined_call_operand.vmem [shape: f32[8,128], index: 3, kind: output, shape index: {}]  }
   0x1   :  { %9 = vsyncpa [#allocation5], 0  ;;  %s427_s12 = smov [#allocation4]   ;;  %s357_s16 = scalar_lea.hbm %s500_s1, 320 }
   0x2   :  { %s25_s13 = sshll.u32 %s427_s12, 4  ;;  %p358_p0 = scmp.ne.s32.totalorder %s500_s1, %s357_s16  ;;  %s26_s13 = int_to_ptr.vmem [resolvable:$true] %s25_s13 }
   0x3   :  { %p361_p1 = scmp.lt.u32.totalorder %s357_s16, %s500_s1 }
   0x5   :  { %p363_p2 = pnand %p361_p1, %p358_p0 }
   0x7   :  { %366 = shalt.err (!%p363_p2)
}
   0x8   :  { %s367_s21 = scalar_lea.vmem %s26_s13, 320  ;;  %p372_p4 = scmp.lt.s32.totalorder %s26_s13, %s26_s13 }
   0x9   :  { %p368_p3 = scmp.ne.s32.totalorder %s26_s13, %s367_s21  ;;  %p373_p5 = scmp.lt.s32.totalorder %s367_s21, %s367_s21 }
   0xb   :  { %p374_p6 = por %p373_p5, %p372_p4 }
   0xd   :  { %p375_p7 = pnand %p374_p6, %p368_p3 }
   0xf   :  { %378 = shalt.err (!%p375_p7)
}
  0x10   :  { %s428_s22 = smov 64   ;;  %s429_s23 = smov 4  }
  0x11   :  { %31 = dma.hbm_to_vmem [thread:$0]  %s500_s1, 320, %s26_s13, [#allocation5], %s428_s22, %s428_s22, %s429_s23  }
  0x12   :  { %s430_s26 = smov [#allocation2]   ;;  %s431_s28 = smov [#allocation6]  }
  0x13   :  { %s16_s27 = sshll.u32 %s430_s26, 4  ;;  %s37_s29 = sshll.u32 %s431_s28, 4  ;;  %s17_s27 = int_to_ptr.vmem [resolvable:$true] %s16_s27  ;;  %s38_s29 = int_to_ptr.vmem [resolvable:$true] %s37_s29 }
  0x14   :  { %s379_s5 = scalar_lea.hbm %s499_s0, 128 }
  0x15   :  { %p380_p8 = scmp.ne.s32.totalorder %s499_s0, %s379_s5  ;;  %p383_p9 = scmp.lt.u32.totalorder %s379_s5, %s499_s0 }
  0x17   :  { %p385_p10 = pnand %p383_p9, %p380_p8 }
  0x19   :  { %388 = shalt.err (!%p385_p10)
}
  0x1a   :  { %s389_s1 = scalar_lea.vmem %s17_s27, 128  ;;  %p394_p12 = scmp.lt.s32.totalorder %s17_s27, %s17_s27 }
  0x1b   :  { %p390_p11 = scmp.ne.s32.totalorder %s17_s27, %s389_s1  ;;  %p395_p13 = scmp.lt.s32.totalorder %s389_s1, %s389_s1 }
  0x1d   :  { %p396_p0 = por %p395_p13, %p394_p12 }
  0x1f   :  { %p397_p1 = pnand %p396_p0, %p390_p11 }
  0x21   :  { %400 = shalt.err (!%p397_p1)
}
  0x22   :  { %19 = dma.hbm_to_vmem [thread:$0]  %s499_s0, 128, %s17_s27, [#allocation3]  }
  0x23   :  { %s401_s14 = scalar_lea.hbm %s501_s2, 1088 }
  0x24   :  { %p402_p2 = scmp.ne.s32.totalorder %s501_s2, %s401_s14  ;;  %p405_p3 = scmp.lt.u32.totalorder %s401_s14, %s501_s2 }
  0x26   :  { %p407_p4 = pnand %p405_p3, %p402_p2 }
  0x28   :  { %410 = shalt.err (!%p407_p4)
}
  0x29   :  { %s411_s19 = scalar_lea.vmem %s38_s29, 1088  ;;  %p416_p6 = scmp.lt.s32.totalorder %s38_s29, %s38_s29 }
  0x2a   :  { %p412_p5 = scmp.ne.s32.totalorder %s38_s29, %s411_s19  ;;  %p417_p7 = scmp.lt.s32.totalorder %s411_s19, %s411_s19 }
  0x2c   :  { %p418_p8 = por %p417_p7, %p416_p6 }
  0x2e   :  { %p419_p9 = pnand %p418_p8, %p412_p5 }
  0x30   :  { %422 = shalt.err (!%p419_p9)
}
  0x31   :  { %43 = dma.hbm_to_vmem [thread:$0]  %s501_s2, 1088, %s38_s29, [#allocation5], %s428_s22, %s428_s22, %s429_s23  }
  0x32   :  { %423 = dma.done.wait [#allocation3], 128  }
  0x33   :  { %424 = vsyncadd [#allocation3], 4294967168 }
  0x34   :  { %425 = dma.done.wait [#allocation5], 1408  }
  0x35   :  { %426 = vsyncadd [#allocation5], 4294965888  ;;  %v432_v0 = vmov 0.0   ;;  %vm433_vm0 = vmmov 0   ;;  %v341_v1 = vld [vmem:[#allocation4] sm:$0xff]   ;;  %v342_v2 = vld [vmem:[#allocation4 + $0x8] sm:$0xff]   ;;  %v62_v13 = vlaneseq }
  0x36   :  { %306 = vmatprep.subr.bf16.mxu0 %v432_v0  ;;  %310 = vmatprep.mubr.msk.bf16.mxu0 %vm433_vm0, %v432_v0  ;;  %v54_v3 = vld [vmem:[#allocation2] sm:$0xff]  ;;  %vm78_vm1 = vcmask 261120   ;;  %v345_v7 = vld [vmem:[#allocation6 + $0x10] sm:$0xff]   ;;  %v346_v8 = vld [vmem:[#allocation6 + $0x18] sm:$0xff]  }
  0x37   :  { %314 = vmatprep.subr.bf16.mxu1 %v432_v0  ;;  %330 = vmatprep.mubr.msk.bf16.mxu1 %vm433_vm0, %v432_v0  ;;  %v343_v4 = vld [vmem:[#allocation6] sm:$0xff]   ;;  %v55_v5 = vpack.c.bf16 %v54_v3, %v54_v3  ;;  %v344_v6 = vld [vmem:[#allocation6 + $0x8] sm:$0xff]   ;;  %v349_v11 = vld [vmem:[#allocation6 + $0x30] sm:$0xff]   ;;  %v63_v14 = vshrl.u32 %v62_v13, 7  ;;  %v235_v28 = vand.u32 127, %v62_v13 }
  0x38   :  { %307 = vmatpush3.bf16.msra.mxu0 %v341_v1  ;;  %315 = vmatpush3.bf16.msra.mxu1 %v343_v4  ;;  %v347_v9 = vld [vmem:[#allocation6 + $0x20] sm:$0xff]   ;;  %v348_v10 = vld [vmem:[#allocation6 + $0x28] sm:$0xff]   ;;  %v350_v12 = vld [vmem:[#allocation6 + $0x38] sm:$0xff]  }
  0x39   :  { %308 = vmatprep.subr.bf16.mxu0 %v432_v0  ;;  %316 = vmatprep.subr.bf16.mxu1 %v432_v0  ;;  %v60_v15 = vld [vmem:[#allocation4 + $0x10] sm:$0x1]  ;;  %v64_v17 = vsub.s32 0, %v63_v14  ;;  %v140_v26 = vld [vmem:[#allocation6 + $0x40] sm:$0x1]  ;;  %vm236_vm2 = vcmp.lt.s32.totalorder %v235_v28, 8 }
  0x3a   :  { %v61_v16 = vunpack.c.l.bf16 %v60_v15  ;;  %v141_v27 = vunpack.c.l.bf16 %v140_v26  ;;  %vm267_vm5 = vcmp.eq.s32.totalorder %v235_v28, 8  ;;  %vm271_vm6 = vcmp.eq.s32.totalorder %v235_v28, 10 }
  0x3c   :  { %309 = vmatpush3.bf16.msra.mxu0 %v342_v2  ;;  %317 = vmatpush3.bf16.msra.mxu1 %v344_v6  ;;  %v65_v18 = vrot.slane %v61_v16, %v64_v17  ;;  %v145_v29 = vrot.slane %v141_v27, %v64_v17 }
  0x3d   :  { %318 = vmatprep.subr.bf16.mxu1 %v432_v0 }
  0x3f   :  { %311 = vmatmul.mubr.msk.bf16.vlgmr.msra.gmra.mrb[0].mxu0 %vm78_vm1, %v55_v5 }
  0x40   :  { %319 = vmatpush3.bf16.msra.mxu1 %v345_v7 }
  0x41   :  { %320 = vmatprep.subr.bf16.mxu1 %v432_v0 }
  0x44   :  { %321 = vmatpush3.bf16.msra.mxu1 %v346_v8 }
  0x45   :  { %322 = vmatprep.subr.bf16.mxu1 %v432_v0 }
  0x48   :  { %323 = vmatpush3.bf16.msra.mxu1 %v347_v9 }
  0x49   :  { %324 = vmatprep.subr.bf16.mxu1 %v432_v0 }
  0x4c   :  { %325 = vmatpush3.bf16.msra.mxu1 %v348_v10 }
  0x4d   :  { %326 = vmatprep.subr.bf16.mxu1 %v432_v0 }
  0x50   :  { %327 = vmatpush3.bf16.msra.mxu1 %v349_v11 }
  0x51   :  { %328 = vmatprep.subr.bf16.mxu1 %v432_v0 }
  0x54   :  { %329 = vmatpush3.bf16.msra.mxu1 %v350_v12 }
 0x112   :  { %v116_v19 = vpop.f32.mrb[0].mxu0 }
 0x113   :  { %v117_v20 = vadd.f32 %v116_v19, %v65_v18  ;;  %v312_v21 = vpop.f32.mrb[1].mxu0 }
 0x114   :  { %v119_v22 = vpop.f32.mrb[2].mxu0 }
 0x115   :  { %351 = vtanh.f32 %v117_v20  ;;  %v313_v23 = vpop.f32.mrb[3].mxu0 }
 0x11f   :  { %v352_v24 = vpop.eup %351 }
 0x120   :  { %v123_v25 = vpack.c.bf16 %v352_v24, %v352_v24 }
 0x122   :  { %331 = vmatmul.mubr.bf16.vlgmr.msra.gmra.mrb[0].mxu1 %v123_v25 }
 0x1f5   :  { %v228_v30 = vpop.f32.mrb[0].mxu1 }
 0x1f6   :  { %v229_v31 = vadd.f32 %v228_v30, %v145_v29  ;;  %v332_v32 = vpop.f32.mrb[1].mxu1 }
 0x1f7   :  { %v231_v33 = vpop.f32.mrb[2].mxu1 }
 0x1f8   :  { %v333_v34 = vpop.f32.mrb[3].mxu1  ;;  %v239_v35 = vsel %vm236_vm2, %v229_v31, -inf }
 0x1f9   :  { %240 = vmax.xlane.f32.xlu0 %v239_v35 }
 0x286   :  { %v241_v36 = vpop.xlane.xlu0 %240 }
 0x287   :  { %vm242_vm3 = vcmp.eq.f32.partialorder %v239_v35, %v241_v36  ;;  %v258_v37 = vsub.f32 %v239_v35, %v241_v36 }
 0x288   :  { %v243_v38 = vsel %vm242_vm3, %v235_v28, 128 }
 0x289   :  { %v245_v39 = vshra.s32 %v243_v38, 16  ;;  %v259_v40 = vmul.f32 1.442695, %v258_v37  ;;  %v244_v43 = vand.u32 65535, %v243_v38 }
 0x28b   :  { %v247_v41 = vcvt.s32.f32 %v245_v39  ;;  %353 = vpow2.f32 %v259_v40  ;;  %v246_v45 = vcvt.s32.f32 %v244_v43 }
 0x28d   :  { %248 = vmin.xlane.f32.xlu0 %v247_v41 }
 0x295   :  { %v354_v42 = vpop.eup %353 }
 0x296   :  { %261 = vadd.xlane.f32.xlu1 %v354_v42 }
 0x31a   :  { %v249_v44 = vpop.xlane.xlu0 %248 }
 0x31b   :  { %vm250_vm4 = vcmp.eq.f32.partialorder %v247_v41, %v249_v44  ;;  %v255_v50 = vcvt.f32.s32 %v249_v44 }
 0x31c   :  { %v251_v46 = vsel %vm250_vm4, %v246_v45, inf }
 0x31d   :  { %252 = vmin.xlane.f32.xlu1 %v251_v46  ;;  %v256_v53 = vshll.u32 %v255_v50, 16 }
 0x323   :  { %v262_v47 = vpop.xlane.xlu1 %261 }
 0x324   :  { %355 = vlog2.f32 %v262_v47 }
 0x32e   :  { %v356_v48 = vpop.eup %355 }
 0x32f   :  { %v264_v49 = vmul.f32 0.6931472, %v356_v48 }
 0x331   :  { %v265_v51 = vadd.f32 %v264_v49, %v241_v36 }
 0x333   :  { %v266_v55 = vsub.f32 %v241_v36, %v265_v51 }
 0x335   :  { %v270_v58 = vsel %vm267_vm5, %v266_v55, %v229_v31 }
 0x3aa   :  { %v253_v52 = vpop.xlane.xlu1 %252 }
 0x3ab   :  { %v254_v54 = vcvt.f32.s32 %v253_v52 }
 0x3ad   :  { %v257_v56 = vadd.s32 %v256_v53, %v254_v54 }
 0x3af   :  { %v272_v57 = vcvt.s32.f32 %v257_v56 }
 0x3b1   :  { %v275_v59 = vsel %vm271_vm6, %v272_v57, %v270_v58 }
 0x3b2   :  { %276 = vst [vmem:[%s502_s3] sm:$0xff] %v275_v59 }
 0x3b3   :  { %281 = vsyncpa [#allocation3], 1 }
 0x3b4   :  { %282 = vsyncpa [#allocation5], 1 }

</bundles_post_ra>
